<compile_context>
chip_gen: v6e
topology: v6e:2x2x1
jax: 0.10.0
libtpu: 0.0.40
codegen_flags: <defaults>
</compile_context>

<pallas_src>
import jax
import jax.numpy as jnp
from jax.experimental import pallas as pl
from jax.experimental.pallas import tpu as pltpu  # noqa: F401  (kept for TPU-specific params if needed)


HIDDEN_DIM = 32
OUTPUT_DIM = 16   # defined by the module but never used in forward


def _identity_kernel(x_ref, o_ref):
    # Single full-block pass-through: one vreg-aligned load + full-width store.
    o_ref[...] = x_ref[...]


def decoder_identity_kernel_call(x):
    """Pallas identity copy of x, presented as a lane-dense 2-D slab.

    The whole tensor is tiny (2 KiB f32 at the demo shape), so we use a single
    grid-less block: one DMA in, one DMA out, one kernel body invocation.
    """
    orig_shape = x.shape
    n = x.size
    if n % 128 == 0:
        slab_shape = (n // 128, 128)       # lane-dense: last dim = 128 lanes
    else:
        slab_shape = (1, n)                # full-extent block (no masking either)
    x2d = x.reshape(slab_shape)

    y2d = pl.pallas_call(
        _identity_kernel,
        out_shape=jax.ShapeDtypeStruct(slab_shape, x.dtype),
        # grid omitted -> grid=(); a single full-array block, no pipelining.
        in_specs=[pl.BlockSpec(slab_shape, lambda: (0, 0))],
        out_specs=pl.BlockSpec(slab_shape, lambda: (0, 0)),
    )(x2d)

    return y2d.reshape(orig_shape)


def decoder_forward(x):
    """Exact semantic match of Decoder.forward: body is `pass` -> returns None.

    Per the performance review, no kernel is launched here: the reference does
    no observable work, so the fastest correct implementation does none either.
    """
    return None


if __name__ == "__main__":
    key = jax.random.PRNGKey(0)
    # Small shapes consistent with a decoder taking hidden_dim features:
    # (batch=2, seq=8, hidden=32).
    x = jax.random.normal(key, (2, 8, HIDDEN_DIM), dtype=jnp.float32)

    # Run the Pallas identity kernel once (validation path) and block on it.
    y = decoder_identity_kernel_call(x)
    jax.block_until_ready(y)

    # Sanity: identity kernel must reproduce its input bit-exactly.
    assert y.shape == x.shape and y.dtype == x.dtype
    assert bool(jnp.all(y == x))

    # Semantic-exact forward (returns None, like the PyTorch module).
    out = decoder_forward(x)
    assert out is None

    print("KERNEL_OK")
</pallas_src>

<mosaic_0001>
module attributes {stable_mosaic.version = 11 : i64} {
  func.func @_identity_kernel(%arg0: memref<4x128xf32, #tpu.memory_space<vmem>>, %arg1: memref<4x128xf32, #tpu.memory_space<vmem>>) attributes {dimension_semantics = [], scalar_prefetch = 0 : i64, scratch_operands = 0 : i64, tpu.core_type = #tpu.core_type<tc>} {
    %c0 = arith.constant 0 : index
    %c0_0 = arith.constant 0 : index
    %0 = vector.load %arg0[%c0, %c0_0] : memref<4x128xf32, #tpu.memory_space<vmem>>, vector<4x128xf32>
    %c0_1 = arith.constant 0 : index
    %c0_2 = arith.constant 0 : index
    %1 = vector.load %arg1[%c0_1, %c0_2] : memref<4x128xf32, #tpu.memory_space<vmem>>, vector<4x128xf32>
    tpu.vector_store %arg1[%c0_1, %c0_2], %0 {strides = array<i32>} : memref<4x128xf32, #tpu.memory_space<vmem>>, vector<4x128xf32>,
    return
  }
}

</mosaic_0001>

<bundles_post_ra>
// kernel: tpu_custom_call.1
= control target key start
LH: loop header
LB: loop body
LE: loop exit
PB: predicated region body
PF: predicated region fallthrough
CT: control target
= control target key end

     0   :  { %6 = vsyncpa [#allocation3], 0  ;;  %s102_s0 = inlined_call_operand.hbm [shape: f32[4,128], index: 0, kind: input, shape index: {}]   ;;  %s103_s1 = inlined_call_operand.hbm [shape: f32[4,128], index: 1, kind: output, shape index: {}]  }
   0x1   :  { %7 = vsyncpa [#allocation4], 0  ;;  %s84_s6 = smov [#allocation2]  }
   0x2   :  { %s14_s7 = sshll.u32 %s84_s6, 4  ;;  %s15_s7 = int_to_ptr.vmem [resolvable:$true] %s14_s7 }
   0x3   :  { %s48_s8 = scalar_lea.vmem %s15_s7, 64  ;;  %p53_p1 = scmp.lt.s32.totalorder %s15_s7, %s15_s7 }
   0x4   :  { %p49_p0 = scmp.ne.s32.totalorder %s15_s7, %s48_s8  ;;  %p54_p2 = scmp.lt.s32.totalorder %s48_s8, %s48_s8 }
   0x6   :  { %p55_p3 = por %p54_p2, %p53_p1 }
   0x8   :  { %p56_p4 = pnand %p55_p3, %p49_p0 }
   0xa   :  { %59 = shalt.err (!%p56_p4)
}
   0xb   :  { %17 = dma.hbm_to_vmem [thread:$0]  %s102_s0, 64, %s15_s7, [#allocation3]  }
   0xc   :  { %80 = dma.done.wait [#allocation3], 64  }
   0xd   :  { %81 = vsyncadd [#allocation3], 4294967232  ;;  %s85_s11 = smov [#allocation5]   ;;  %v21_v0 = vld [vmem:[#allocation2] sm:$0xf] }
   0xe   :  { %s29_s12 = sshll.u32 %s85_s11, 4  ;;  %22 = vst [vmem:[#allocation5] sm:$0xf] %v21_v0  ;;  %s30_s12 = int_to_ptr.vmem [resolvable:$true] %s29_s12 }
   0xf   :  { %s60_s13 = scalar_lea.vmem %s30_s12, 64  ;;  %p65_p6 = scmp.lt.s32.totalorder %s30_s12, %s30_s12 }
  0x10   :  { %p61_p5 = scmp.ne.s32.totalorder %s30_s12, %s60_s13  ;;  %p66_p7 = scmp.lt.s32.totalorder %s60_s13, %s60_s13 }
  0x12   :  { %p67_p8 = por %p66_p7, %p65_p6 }
  0x14   :  { %p68_p9 = pnand %p67_p8, %p61_p5 }
  0x16   :  { %71 = shalt.err (!%p68_p9)
}
  0x17   :  { %32 = dma.vmem_to_hbm [thread:$0]  %s30_s12, 64, %s103_s1, [#allocation4]  }
  0x18   :  { %82 = dma.done.wait [#allocation4], 64  }
  0x19   :  { %83 = vsyncadd [#allocation4], 4294967232 }
  0x1a   :  { %36 = vsyncpa [#allocation3], 1 }
  0x1b   :  { %37 = vsyncpa [#allocation4], 1 }

</bundles_post_ra>
